<compile_context>
chip_gen: v5e
topology: v5e:2x2
jax: 0.10.0
libtpu: 0.0.40
codegen_flags: <defaults>
</compile_context>

<pallas_src>
import jax
import jax.numpy as jnp
from jax.experimental import pallas as pl
from jax.experimental.pallas import tpu as pltpu

NUM_REPEATS = 6  # [v1, v1, v2, v3, v4, v5] -> six copies of the same product


def mm_cat(x1, x2):
    M, K = x1.shape
    K2, N = x2.shape
    assert K == K2
    assert N == 1, "torch354.Model uses x2 of shape (K, 1)"

    # Layout plumbing only (not compute hoisting):
    #  - x2 presented lane-dense as a (1, K) row (contiguous reshape/bitcast),
    #  - stacked under x1 so the kernel gets a single input buffer -> 1 DMA.
    slab = jnp.concatenate([x1, x2.reshape(1, K)], axis=0)  # (M+1, K)

    def kernel(xs_ref, o_ref):
        a = xs_ref[:M, :]                            # (M, K)  static slice: zero-cost view
        b = xs_ref[M:M + 1, :]                       # (1, K)
        prod = a * b                                 # VPU broadcast multiply
        v = jnp.sum(prod, axis=1, keepdims=True)     # XLU lane reduce -> (M, 1)
        o_ref[...] = v.astype(o_ref.dtype)

    v = pl.pallas_call(
        kernel,
        out_shape=jax.ShapeDtypeStruct((M, 1), x1.dtype),
        # No grid: single invocation, whole (tiny) operands resident in VMEM,
        # no pipeline prologue/epilogue, no double buffering.
        in_specs=[pl.BlockSpec(memory_space=pltpu.MemorySpace.VMEM)],
        out_specs=pl.BlockSpec(memory_space=pltpu.MemorySpace.VMEM),
    )(slab)

    # Six identical columns; replication left to XLA so it fuses into consumers.
    return jnp.tile(v, (1, NUM_REPEATS))


if __name__ == "__main__":
    key = jax.random.PRNGKey(0)
    k1, k2, k3 = jax.random.split(key, 3)

    # Mirror the torch script's input construction, deterministically.
    x1 = jax.random.normal(k1, (2, 4), dtype=jnp.float32)
    x2 = 2.0 * jax.random.normal(k2, (4, 1), dtype=jnp.float32) + jax.random.normal(
        k3, (4, 1), dtype=jnp.float32
    )

    out = mm_cat(x1, x2)
    jax.block_until_ready(out)

    # Reference check in plain JAX.
    v = x1 @ x2
    ref = jnp.concatenate([v] * NUM_REPEATS, axis=1)
    assert out.shape == (2, 6), out.shape
    assert jnp.allclose(out, ref, atol=1e-5, rtol=1e-5)

    print("KERNEL_OK")
</pallas_src>

<mosaic_0001>
module attributes {stable_mosaic.version = 11 : i64} {
  func.func @kernel(%arg0: memref<3x4xf32, #tpu.memory_space<vmem>>, %arg1: memref<2x1xf32, #tpu.memory_space<vmem>>) attributes {dimension_semantics = [], scalar_prefetch = 0 : i64, scratch_operands = 0 : i64, tpu.core_type = #tpu.core_type<tc>} {
    %c0 = arith.constant 0 : index
    %c0_0 = arith.constant 0 : index
    %0 = vector.load %arg0[%c0, %c0_0] : memref<3x4xf32, #tpu.memory_space<vmem>>, vector<2x4xf32>
    %c2 = arith.constant 2 : index
    %c0_1 = arith.constant 0 : index
    %1 = vector.load %arg0[%c2, %c0_1] : memref<3x4xf32, #tpu.memory_space<vmem>>, vector<1x4xf32>
    %2 = vector.broadcast %1 : vector<1x4xf32> to vector<2x4xf32>
    %3 = arith.mulf %0, %2 : vector<2x4xf32>
    %cst = arith.constant dense<0.000000e+00> : vector<2xf32>
    %4 = vector.multi_reduction <add>, %3, %cst [1] : vector<2x4xf32> to vector<2xf32>
    %5 = vector.shape_cast %4 : vector<2xf32> to vector<2x1xf32>
    %c0_2 = arith.constant 0 : index
    %c0_3 = arith.constant 0 : index
    %6 = vector.load %arg1[%c0_2, %c0_3] : memref<2x1xf32, #tpu.memory_space<vmem>>, vector<2x1xf32>
    tpu.vector_store %arg1[%c0_2, %c0_3], %5 {strides = array<i32>} : memref<2x1xf32, #tpu.memory_space<vmem>>, vector<2x1xf32>,
    return
  }
}

</mosaic_0001>

<bundles_post_ra>
// kernel: tpu_custom_call.1
= control target key start
LH: loop header
LB: loop body
LE: loop exit
PB: predicated region body
PF: predicated region fallthrough
CT: control target
= control target key end

     0   :  { %6 = vsyncpa [#allocation3], 0  ;;  %s65_s9 = smov [#allocation2]   ;;  %s82_s0 = inlined_call_operand.hbm [shape: f32[3,4], index: 0, kind: input, shape index: {}]   ;;  %s83_s1 = inlined_call_operand.vmem [shape: f32[2,1], index: 1, kind: output, shape index: {}]  }
   0x1   :  { %s12_s8 = sshll.u32 %s82_s0, 4  ;;  %s14_s10 = sshll.u32 %s65_s9, 4  ;;  %s13_s8 = int_to_ptr.hbm [resolvable:$true] %s12_s8  ;;  %s15_s10 = int_to_ptr.vmem [resolvable:$true] %s14_s10 }
   0x2   :  { %17 = dma.hbm_to_vmem [thread:$0]  %s13_s8, 64, %s15_s10, [#allocation3]  }
   0x3   :  { %63 = dma.done.wait [#allocation3], 64  }
   0x4   :  { %64 = vsyncadd [#allocation3], 4294967232  ;;  %v22_v0 = vld [vmem:[#allocation2] sm:$0x3]  ;;  %v38_v1 = vld [vmem:[#allocation2 + $0x2] ss:$0 sm:$0xff] }
   0x5   :  { %vm26_vm0 = vcmask 25600   ;;  %v25_v2 = vmul.f32 %v38_v1, %v22_v0  ;;  %vm30_vm1 = vcmask 1024  }
   0x7   :  { %v27_v3 = vsel %vm26_vm0, %v25_v2, 0.0 }
   0x8   :  { %28 = vadd.xlane.f32.xlu0 %v27_v3 }
  0x7b   :  { %v29_v4 = vpop.xlane.xlu0 %28 }
  0x7c   :  { %31 = vst.msk [vmem:[%s83_s1] sm:$0x3] %vm30_vm1, %v29_v4 }
  0x7d   :  { %36 = vsyncpa [#allocation3], 1 }

</bundles_post_ra>
